<compile_context>
chip_gen: v5e
topology: v5e:2x2
jax: 0.10.0
libtpu: 0.0.40
codegen_flags: <defaults>
</compile_context>

<pallas_src>
import jax
import jax.numpy as jnp
from jax.experimental import pallas as pl
from jax.experimental.pallas import tpu as pltpu


def _sublane_group(dtype) -> int:
    """Sublane packing granularity: 8 rows for 32-bit, 16 for 16-bit, 32 for 8-bit dtypes."""
    return max(8, 32 // jnp.dtype(dtype).itemsize)


def _round_up(x: int, m: int) -> int:
    return ((x + m - 1) // m) * m


def _chip_params():
    """Generation-aware block / VMEM budgets. Conservative (v5e-safe) fallback if unknown."""
    kind = ""
    try:
        kind = jax.devices()[0].device_kind.lower()
    except Exception:
        pass
    vmem_cap = None
    try:
        vmem_cap = getattr(pltpu.get_tpu_info(), "vmem_capacity_bytes", None)
    except Exception:
        pass

    if ("v6" in kind) or ("trillium" in kind):
        # 128 MiB VMEM, ~1.4 TB/s HBM: big blocks push step overhead below ~2%.
        p = dict(out_block_bytes=24 << 20, lane_tile_bytes=2 << 20,
                 vmem_limit_bytes=96 << 20, min_parallel_blocks=1)
    elif ("v7" in kind) or ("tpu7" in kind) or ("7x" in kind):
        # 64 MiB VMEM, 3.2 TB/s HBM, 2 TensorCores: tighter cap + >=2 parallel blocks.
        p = dict(out_block_bytes=12 << 20, lane_tile_bytes=1 << 20,
                 vmem_limit_bytes=48 << 20, min_parallel_blocks=2)
    else:
        # v5e / unknown: at ~0.8 TB/s a 4 MiB block already amortizes the ~0.35us step
        # overhead; stay inside the 16 MiB default scoped VMEM.
        p = dict(out_block_bytes=4 << 20, lane_tile_bytes=512 << 10,
                 vmem_limit_bytes=None, min_parallel_blocks=1)

    if vmem_cap is not None and p["vmem_limit_bytes"] is not None:
        p["vmem_limit_bytes"] = min(int(p["vmem_limit_bytes"]), int(vmem_cap) * 3 // 4)
    return p


def _lane_tile(lf_pad: int, lane_tile_bytes: int, itemsize: int) -> int:
    """Largest 128-multiple divisor of lf_pad whose bytes fit lane_tile_bytes (>= 128)."""
    m = lf_pad // 128
    cap = max(1, lane_tile_bytes // (128 * itemsize))
    for d in range(min(m, cap), 0, -1):
        if m % d == 0:
            return d * 128
    return 128


def _pos_embed_kernel(w_ref, o_ref):
    # w_ref: (1, C)  lane-dense slice of the flattened positional table (block index constant
    #                along the inner batch grid axis -> stays resident in VMEM).
    # o_ref: (TB, C) output block covering TB batch rows.
    o_ref[...] = jnp.broadcast_to(w_ref[...], o_ref.shape)


def pos_embed_tokens(tokens: jax.Array, W_pos: jax.Array,
                     past_kv_pos_offset: int = 0) -> jax.Array:
    """Forward pass of PosEmbedTokens.

    tokens: [batch, position]  (values unused; only the shape matters)
    W_pos : [n_ctx, d_model]
    returns: [batch, tokens.shape[-2], d_model]
    """
    # TODO(synk): the reference forward ignores past_kv_pos_offset (standard TransformerLens
    # PosEmbed would slice W_pos[offset:offset+L]); kept ignored for exact parity.
    del past_kv_pos_offset

    # Exact PyTorch semantics: size(-2).  For 2-D [batch, pos] tokens this equals the batch.
    # TODO(synk): the module likely intended tokens.shape[-1] (seq length); kept for parity.
    tokens_length = tokens.shape[-2]
    batch = tokens.shape[0]
    n_ctx, d_model = W_pos.shape
    if tokens_length > n_ctx:
        raise ValueError(f"tokens_length={tokens_length} exceeds n_ctx={n_ctx}")

    dtype = W_pos.dtype
    itemsize = jnp.dtype(dtype).itemsize
    sub = _sublane_group(dtype)
    params = _chip_params()

    # Lane-dense layout: flatten (L, d_model) -> (1, Lf), pad lanes to a multiple of 128 so
    # every store is unmasked regardless of d_model / L.
    Lf = tokens_length * d_model
    Lf_pad = _round_up(Lf, 128)
    w_flat = W_pos[:tokens_length, :].reshape(1, Lf)
    if Lf_pad != Lf:
        w_flat = jnp.pad(w_flat, ((0, 0), (0, Lf_pad - Lf)))

    # Lane-axis tile: 128-aligned divisor of the padded extent, byte-capped.
    C = _lane_tile(Lf_pad, params["lane_tile_bytes"], itemsize)
    grid_c = Lf_pad // C

    # Batch tile: as many rows as fit the per-block byte budget; dtype-aware sublane multiple
    # unless one block covers the whole batch.
    rows_fit = max(1, params["out_block_bytes"] // (C * itemsize))
    if rows_fit >= batch:
        TB = batch
    else:
        TB = max(sub, (rows_fit // sub) * sub)

    # v7x: guarantee >=2 blocks along a parallel axis for non-trivial outputs so both
    # TensorCores share the HBM writeback (no-op on v5e/v6e; skipped for tiny problems).
    total_bytes = batch * Lf_pad * itemsize
    if (params["min_parallel_blocks"] > 1 and grid_c < params["min_parallel_blocks"]
            and total_bytes > (2 << 20) and batch >= params["min_parallel_blocks"] * sub):
        TB = min(TB, _round_up(pl.cdiv(batch, params["min_parallel_blocks"]), sub))

    # Pad batch so TB divides it exactly (full, unmasked blocks) — unless the padding would
    # waste more than ~12.5% of the HBM writes, in which case accept one masked edge block.
    batch_pad = _round_up(batch, TB)
    if batch_pad > batch and (batch_pad - batch) * 8 > batch_pad:
        batch_pad = batch
    grid_b = pl.cdiv(batch_pad, TB)

    cp_kwargs = dict(dimension_semantics=("parallel", "parallel"))
    if params["vmem_limit_bytes"] is not None:
        cp_kwargs["vmem_limit_bytes"] = int(params["vmem_limit_bytes"])

    out_flat = pl.pallas_call(
        _pos_embed_kernel,
        out_shape=jax.ShapeDtypeStruct((batch_pad, Lf_pad), dtype),
        grid_spec=pltpu.PrefetchScalarGridSpec(
            num_scalar_prefetch=0,
            # Lane tile outermost, batch tile innermost: the W_pos block index is constant
            # across the inner (batch) axis, so it is fetched from HBM once per column tile.
            grid=(grid_c, grid_b),
            in_specs=[pl.BlockSpec((1, C), lambda jc, ib: (0, jc))],
            out_specs=pl.BlockSpec((TB, C), lambda jc, ib: (ib, jc)),
        ),
        compiler_params=pltpu.CompilerParams(**cp_kwargs),
        cost_estimate=pl.CostEstimate(
            flops=0,
            transcendentals=0,
            bytes_accessed=(batch_pad * Lf_pad + Lf_pad) * itemsize,
        ),
    )(w_flat)

    if batch_pad != batch or Lf_pad != Lf:
        out_flat = out_flat[:batch, :Lf]
    return out_flat.reshape(batch, tokens_length, d_model)


if __name__ == "__main__":
    key = jax.random.PRNGKey(0)
    k_w, k_t = jax.random.split(key)

    # cfg: n_ctx=16, d_model=32 ; inputs: batch=2, seq=8
    n_ctx, d_model = 16, 32
    batch, seq = 2, 8

    W_pos = jax.random.normal(k_w, (n_ctx, d_model), dtype=jnp.float32)
    tokens = jax.random.randint(k_t, (batch, seq), 0, 10, dtype=jnp.int32)

    out = pos_embed_tokens(tokens, W_pos)
    out = jax.block_until_ready(out)

    # Reference check (pure JAX) of the exact PyTorch semantics.
    L = tokens.shape[-2]
    ref = jnp.broadcast_to(W_pos[:L, :][None, :, :], (tokens.shape[0], L, d_model))
    assert out.shape == (batch, L, d_model), out.shape
    assert jnp.allclose(out, ref), "mismatch vs reference"

    print("KERNEL_OK")
</pallas_src>

<mosaic_0001>
module attributes {stable_mosaic.version = 11 : i64} {
  func.func @_pos_embed_kernel(%arg0: i32, %arg1: i32, %arg2: memref<1x128xf32, #tpu.memory_space<vmem>>, %arg3: memref<2x128xf32, #tpu.memory_space<vmem>>) attributes {dimension_semantics = [#tpu.dimension_semantics<parallel>, #tpu.dimension_semantics<parallel>], iteration_bounds = array<i64: 1, 1>, scalar_prefetch = 0 : i64, scratch_operands = 0 : i64, tpu.core_type = #tpu.core_type<tc>, window_params = [{transform_indices = @transform_0, window_bounds = array<i64: 1, 128>}, {transform_indices = @transform_1, window_bounds = array<i64: 2, 128>}]} {
    %c0 = arith.constant 0 : index
    %c0_0 = arith.constant 0 : index
    %0 = vector.load %arg2[%c0, %c0_0] : memref<1x128xf32, #tpu.memory_space<vmem>>, vector<1x128xf32>
    %1 = vector.shape_cast %0 : vector<1x128xf32> to vector<1x128xf32>
    %2 = vector.broadcast %1 : vector<1x128xf32> to vector<2x128xf32>
    %c0_1 = arith.constant 0 : index
    %c0_2 = arith.constant 0 : index
    %3 = vector.load %arg3[%c0_1, %c0_2] : memref<2x128xf32, #tpu.memory_space<vmem>>, vector<2x128xf32>
    tpu.vector_store %arg3[%c0_1, %c0_2], %2 {strides = array<i32>} : memref<2x128xf32, #tpu.memory_space<vmem>>, vector<2x128xf32>,
    return
  }
  func.func @transform_0(%arg0: i32, %arg1: i32) -> (i32, i32) {
    %c0_i32 = arith.constant 0 : i32
    %c0_i32_0 = arith.constant 0 : i32
    return %c0_i32, %arg0 : i32, i32
  }
  func.func @transform_1(%arg0: i32, %arg1: i32) -> (i32, i32) {
    %c0_i32 = arith.constant 0 : i32
    return %arg1, %arg0 : i32, i32
  }
}

</mosaic_0001>

<bundles_post_ra>
// kernel: tpu_custom_call.1
= control target key start
LH: loop header
LB: loop body
LE: loop exit
PB: predicated region body
PF: predicated region fallthrough
CT: control target
= control target key end

     0   :  { %6 = vsyncpa [#allocation3], 0  ;;  %s118_s0 = inlined_call_operand.hbm [shape: f32[1,128], index: 0, kind: input, shape index: {}]   ;;  %s119_s1 = inlined_call_operand.hbm [shape: f32[2,128], index: 1, kind: output, shape index: {}]  }
   0x1   :  { %7 = vsyncpa [#allocation4], 0  ;;  %s13_s8 = sshll.u32 %s118_s0, 4  ;;  %s100_s9 = smov [#allocation2]   ;;  %s14_s8 = int_to_ptr.hbm [resolvable:$true] %s13_s8 }
   0x2   :  { %s15_s10 = sshll.u32 %s100_s9, 4  ;;  %s16_s10 = int_to_ptr.vmem [resolvable:$true] %s15_s10 }
   0x3   :  { %18 = dma.hbm_to_vmem [thread:$0]  %s14_s8, 16, %s16_s10, [#allocation3]  }
   0x4   :  { %96 = dma.done.wait [#allocation3], 16  }
   0x5   :  { %97 = vsyncadd [#allocation3], 4294967280  ;;  %s101_s11 = smov [#allocation5]   ;;  %s35_s15 = sshll.u32 %s119_s1, 4  ;;  %v47_v0 = vld [vmem:[#allocation2] ss:$0 sm:$0xff]  ;;  %s36_s15 = int_to_ptr.hbm [resolvable:$true] %s35_s15 }
   0x6   :  { %s33_s12 = sshll.u32 %s101_s11, 4  ;;  %27 = vst [vmem:[#allocation5] sm:$0x3] %v47_v0  ;;  %s34_s12 = int_to_ptr.vmem [resolvable:$true] %s33_s12 }
   0x7   :  { %38 = dma.vmem_to_hbm [thread:$0]  %s34_s12, 32, %s36_s15, [#allocation4]  }
   0x8   :  { %98 = dma.done.wait [#allocation4], 32  }
   0x9   :  { %99 = vsyncadd [#allocation4], 4294967264 }
   0xa   :  { %43 = vsyncpa [#allocation3], 1 }
   0xb   :  { %44 = vsyncpa [#allocation4], 1 }

</bundles_post_ra>
